<compile_context>
chip_gen: v7x
topology: tpu7x:2x2x1
jax: 0.10.0
libtpu: 0.0.40
codegen_flags: <defaults>
</compile_context>

<pallas_src>
import functools

import jax
import jax.numpy as jnp
from jax.experimental import pallas as pl
from jax.experimental.pallas import tpu as pltpu


def _pool_gate_kernel(x_ref, w1p_ref, w2p_ref, gate_ref, sum_acc, max_acc,
                      *, hw_total):
    """Accumulate avg/max pools over HW tiles; emit sigmoid gate on the last tile."""
    t = pl.program_id(1)
    nt = pl.num_programs(1)

    xb = x_ref[0].astype(jnp.float32)              # (C, hw_tile), accumulate in f32
    psum = jnp.sum(xb, axis=1, keepdims=True)      # (C, 1)
    pmax = jnp.max(xb, axis=1, keepdims=True)      # (C, 1)

    @pl.when(t == 0)
    def _():
        sum_acc[...] = psum
        max_acc[...] = pmax

    @pl.when(t > 0)
    def _():
        sum_acc[...] = sum_acc[...] + psum
        max_acc[...] = jnp.maximum(max_acc[...], pmax)

    @pl.when(t == nt - 1)
    def _():
        avg = sum_acc[...] * (1.0 / float(hw_total))   # true mean over full HW
        mx = max_acc[...]                              # (C, 1)
        c = avg.shape[0]
        # Pack both pooled branches into one lane-dense (C, 128) operand:
        # lane 0 = avg branch, lane 1 = max branch, remaining lanes = 0 (inert).
        lane = jax.lax.broadcasted_iota(jnp.int32, (c, 128), 1)
        pooled = jnp.where(lane == 0, avg, 0.0) + jnp.where(lane == 1, mx, 0.0)
        # Shared bias-free MLP, one dot per layer for BOTH branches
        # (column-vector form of the PyTorch Linear: y = W2 @ relu(W1 @ p)).
        h = jnp.dot(w1p_ref[...], pooled, preferred_element_type=jnp.float32)  # (Crp, 128)
        h = jnp.maximum(h, 0.0)
        y = jnp.dot(w2p_ref[...], h, preferred_element_type=jnp.float32)       # (C, 128)
        gate_ref[0] = jax.nn.sigmoid(y[:, 0:1] + y[:, 1:2])                    # (C, 1), f32


def _apply_gate_kernel(x_ref, gate_ref, o_ref):
    xb = x_ref[0].astype(jnp.float32)              # (C, hw_tile)
    o_ref[0] = (xb * gate_ref[0]).astype(o_ref.dtype)


def _pick_hw_tile(hw, c, itemsize, target_bytes=2 * 1024 * 1024, cap=4096):
    """Largest multiple-of-128 divisor of hw keeping one block around target_bytes."""
    if hw % 128 != 0:
        return hw                                   # single full-width tile
    max_tile = (target_bytes // max(1, c * itemsize)) // 128 * 128
    max_tile = max(128, min(cap, max_tile))
    if hw <= max_tile:
        return hw
    t = max_tile
    while t >= 128:
        if hw % t == 0:
            return t
        t -= 128
    return hw


def channel_attention(x_nchw, w1, w2, *, io_dtype=jnp.bfloat16, hw_tile=None,
                      vmem_limit_bytes=48 * 1024 * 1024):
    """CBAM channel attention.

    x_nchw: (B, C, H, W) float
    w1: (C//ratio, C)   first nn.Linear weight (PyTorch layout, no bias)
    w2: (C, C//ratio)   second nn.Linear weight (PyTorch layout, no bias)
    Returns refined features (B, C, H, W) in `io_dtype` (bf16 by default to
    halve HBM traffic of this bandwidth-bound op; pass jnp.float32 for exact
    f32 I/O). Internal pooling/MLP/sigmoid math is f32 in both cases.
    """
    B, C, H, W = x_nchw.shape
    HW = H * W
    x = x_nchw.reshape(B, C, HW).astype(io_dtype)

    if hw_tile is None:
        hw_tile = _pick_hw_tile(HW, C, jnp.dtype(io_dtype).itemsize)
    assert HW % hw_tile == 0 and (hw_tile % 128 == 0 or hw_tile == HW)
    n_hw = HW // hw_tile

    # Zero-pad the hidden dim to a multiple of 128 (lane-dense MLP; the extra
    # rows/cols are zero so they contribute nothing to the result).
    Cr = w1.shape[0]
    Crp = max(128, ((Cr + 127) // 128) * 128)
    w1p = jnp.zeros((Crp, C), jnp.float32).at[:Cr, :].set(w1.astype(jnp.float32))
    w2p = jnp.zeros((C, Crp), jnp.float32).at[:, :Cr].set(w2.astype(jnp.float32))

    # Pass 1: pooled stats + shared MLP + sigmoid -> per-(batch, channel) gate.
    gate = pl.pallas_call(
        functools.partial(_pool_gate_kernel, hw_total=HW),
        out_shape=jax.ShapeDtypeStruct((B, C, 1), jnp.float32),
        grid_spec=pltpu.PrefetchScalarGridSpec(
            num_scalar_prefetch=0,
            grid=(B, n_hw),
            in_specs=[
                pl.BlockSpec((1, C, hw_tile), lambda b, t: (b, 0, t)),
                pl.BlockSpec((Crp, C), lambda b, t: (0, 0)),
                pl.BlockSpec((C, Crp), lambda b, t: (0, 0)),
            ],
            out_specs=pl.BlockSpec((1, C, 1), lambda b, t: (b, 0, 0)),
            scratch_shapes=[pltpu.VMEM((C, 1), jnp.float32),
                            pltpu.VMEM((C, 1), jnp.float32)],
        ),
        compiler_params=pltpu.CompilerParams(
            dimension_semantics=("parallel", "arbitrary"),
            vmem_limit_bytes=vmem_limit_bytes),
    )(x, w1p, w2p)

    # Pass 2: fully parallel, lane-dense gated multiply (1 read + 1 write of x).
    out = pl.pallas_call(
        _apply_gate_kernel,
        out_shape=jax.ShapeDtypeStruct((B, C, HW), io_dtype),
        grid_spec=pltpu.PrefetchScalarGridSpec(
            num_scalar_prefetch=0,
            grid=(B, n_hw),
            in_specs=[
                pl.BlockSpec((1, C, hw_tile), lambda b, t: (b, 0, t)),
                pl.BlockSpec((1, C, 1), lambda b, t: (b, 0, 0)),
            ],
            out_specs=pl.BlockSpec((1, C, hw_tile), lambda b, t: (b, 0, t)),
        ),
        compiler_params=pltpu.CompilerParams(
            dimension_semantics=("parallel", "parallel"),
            vmem_limit_bytes=vmem_limit_bytes),
    )(x, gate)

    return out.reshape(B, C, H, W)


def reference_channel_attention(x, w1, w2):
    """Pure-JAX reference (f32 math on the given input values)."""
    B, C, H, W = x.shape
    xf = x.reshape(B, C, H * W).astype(jnp.float32)
    avg = jnp.mean(xf, axis=-1)              # (B, C)
    mx = jnp.max(xf, axis=-1)                # (B, C)

    def mlp(v):
        return jnp.maximum(v @ w1.T.astype(jnp.float32), 0.0) @ w2.T.astype(jnp.float32)

    gate = jax.nn.sigmoid(mlp(avg) + mlp(mx))[:, :, None, None]
    return xf.reshape(B, C, H, W) * gate


if __name__ == "__main__":
    key = jax.random.PRNGKey(0)
    B, C, H, W = 2, 4, 16, 16
    ratio = 4
    Cr = max(1, C // ratio)

    kx, k1, k2 = jax.random.split(key, 3)
    x = jax.random.normal(kx, (B, C, H, W), dtype=jnp.float32)
    # Deterministic synthetic weights (PyTorch nn.Linear weight shapes, no bias).
    w1 = jax.random.normal(k1, (Cr, C), dtype=jnp.float32) * 0.1
    w2 = jax.random.normal(k2, (C, Cr), dtype=jnp.float32) * 0.1

    # Reference on the bf16-quantized input (same values the kernel sees).
    x_q = x.astype(jnp.bfloat16)
    ref = reference_channel_attention(x_q, w1, w2)

    # Multi-tile spatial reduction path (HW=256 -> 2 tiles of 128).
    out = channel_attention(x, w1, w2, hw_tile=128)
    out = jax.block_until_ready(out)
    assert out.shape == (B, C, H, W)
    assert out.dtype == jnp.bfloat16
    assert jnp.allclose(out.astype(jnp.float32), ref, atol=2e-2, rtol=2e-2), \
        "mismatch vs reference (hw_tile=128)"

    # Auto-tiled (single-tile) path.
    out2 = channel_attention(x, w1, w2)
    out2 = jax.block_until_ready(out2)
    assert jnp.allclose(out2.astype(jnp.float32), ref, atol=2e-2, rtol=2e-2), \
        "mismatch vs reference (auto tile)"

    print("KERNEL_OK")
</pallas_src>

<mosaic_0001>
module attributes {stable_mosaic.version = 11 : i64} {
  func.func @_pool_gate_kernel(%arg0: i32, %arg1: i32, %arg2: memref<1x4x128xbf16, #tpu.memory_space<vmem>>, %arg3: memref<128x4xf32, #tpu.memory_space<vmem>>, %arg4: memref<4x128xf32, #tpu.memory_space<vmem>>, %arg5: memref<1x4x1xf32, #tpu.memory_space<vmem>>, %arg6: memref<4x1xf32, #tpu.memory_space<vmem>>, %arg7: memref<4x1xf32, #tpu.memory_space<vmem>>) attributes {dimension_semantics = [#tpu.dimension_semantics<parallel>, #tpu.dimension_semantics<arbitrary>], iteration_bounds = array<i64: 2, 2>, scalar_prefetch = 0 : i64, scratch_operands = 2 : i64, tpu.core_type = #tpu.core_type<tc>, window_params = [{transform_indices = @transform_0, window_bounds = array<i64: 1, 4, 128>}, {pipeline_mode = #tpu.pipeline_mode<synchronous>, transform_indices = @transform_1, window_bounds = array<i64: 128, 4>}, {pipeline_mode = #tpu.pipeline_mode<synchronous>, transform_indices = @transform_2, window_bounds = array<i64: 4, 128>}, {transform_indices = @transform_3, window_bounds = array<i64: 1, 4, 1>}]} {
    %c0 = arith.constant 0 : index
    %c0_0 = arith.constant 0 : index
    %c0_1 = arith.constant 0 : index
    %0 = vector.load %arg2[%c0, %c0_0, %c0_1] : memref<1x4x128xbf16, #tpu.memory_space<vmem>>, vector<1x4x128xbf16>
    %1 = vector.shape_cast %0 : vector<1x4x128xbf16> to vector<4x128xbf16>
    %2 = arith.extf %1 : vector<4x128xbf16> to vector<4x128xf32>
    %cst = arith.constant dense<0.000000e+00> : vector<4xf32>
    %3 = vector.multi_reduction <add>, %2, %cst [1] : vector<4x128xf32> to vector<4xf32>
    %4 = vector.shape_cast %3 : vector<4xf32> to vector<4x1xf32>
    %cst_2 = arith.constant dense<0xFF800000> : vector<4xf32>
    %5 = vector.multi_reduction <maximumf>, %2, %cst_2 [1] : vector<4x128xf32> to vector<4xf32>
    %6 = vector.shape_cast %5 : vector<4xf32> to vector<4x1xf32>
    %c0_i32 = arith.constant 0 : i32
    %7 = arith.cmpi eq, %arg1, %c0_i32 : i32
    %8 = arith.extui %7 : i1 to i32
    %c0_i32_3 = arith.constant 0 : i32
    %9 = arith.cmpi ne, %8, %c0_i32_3 : i32
    scf.if %9 {
      %c0_7 = arith.constant 0 : index
      %c0_8 = arith.constant 0 : index
      %16 = vector.load %arg6[%c0_7, %c0_8] : memref<4x1xf32, #tpu.memory_space<vmem>>, vector<4x1xf32>
      tpu.vector_store %arg6[%c0_7, %c0_8], %4 {strides = array<i32>} : memref<4x1xf32, #tpu.memory_space<vmem>>, vector<4x1xf32>,
      %c0_9 = arith.constant 0 : index
      %c0_10 = arith.constant 0 : index
      %17 = vector.load %arg7[%c0_9, %c0_10] : memref<4x1xf32, #tpu.memory_space<vmem>>, vector<4x1xf32>
      tpu.vector_store %arg7[%c0_9, %c0_10], %6 {strides = array<i32>} : memref<4x1xf32, #tpu.memory_space<vmem>>, vector<4x1xf32>,
    } else {
    }
    %c0_i32_4 = arith.constant 0 : i32
    %10 = arith.cmpi sgt, %arg1, %c0_i32_4 : i32
    %11 = arith.extui %10 : i1 to i32
    %c0_i32_5 = arith.constant 0 : i32
    %12 = arith.cmpi ne, %11, %c0_i32_5 : i32
    scf.if %12 {
      %c0_7 = arith.constant 0 : index
      %c0_8 = arith.constant 0 : index
      %16 = vector.load %arg6[%c0_7, %c0_8] : memref<4x1xf32, #tpu.memory_space<vmem>>, vector<4x1xf32>
      %17 = arith.addf %16, %4 : vector<4x1xf32>
      %c0_9 = arith.constant 0 : index
      %c0_10 = arith.constant 0 : index
      %18 = vector.load %arg6[%c0_9, %c0_10] : memref<4x1xf32, #tpu.memory_space<vmem>>, vector<4x1xf32>
      tpu.vector_store %arg6[%c0_9, %c0_10], %17 {strides = array<i32>} : memref<4x1xf32, #tpu.memory_space<vmem>>, vector<4x1xf32>,
      %c0_11 = arith.constant 0 : index
      %c0_12 = arith.constant 0 : index
      %19 = vector.load %arg7[%c0_11, %c0_12] : memref<4x1xf32, #tpu.memory_space<vmem>>, vector<4x1xf32>
      %20 = arith.maximumf %19, %6 : vector<4x1xf32>
      %c0_13 = arith.constant 0 : index
      %c0_14 = arith.constant 0 : index
      %21 = vector.load %arg7[%c0_13, %c0_14] : memref<4x1xf32, #tpu.memory_space<vmem>>, vector<4x1xf32>
      tpu.vector_store %arg7[%c0_13, %c0_14], %20 {strides = array<i32>} : memref<4x1xf32, #tpu.memory_space<vmem>>, vector<4x1xf32>,
    } else {
    }
    %c1_i32 = arith.constant 1 : i32
    %13 = arith.cmpi eq, %arg1, %c1_i32 : i32
    %14 = arith.extui %13 : i1 to i32
    %c0_i32_6 = arith.constant 0 : i32
    %15 = arith.cmpi ne, %14, %c0_i32_6 : i32
    scf.if %15 {
      %c0_7 = arith.constant 0 : index
      %c0_8 = arith.constant 0 : index
      %16 = vector.load %arg6[%c0_7, %c0_8] : memref<4x1xf32, #tpu.memory_space<vmem>>, vector<4x1xf32>
      %cst_9 = arith.constant 3.906250e-03 : f32
      %17 = vector.broadcast %cst_9 : f32 to vector<4x1xf32>
      %18 = arith.mulf %16, %17 : vector<4x1xf32>
      %c0_10 = arith.constant 0 : index
      %c0_11 = arith.constant 0 : index
      %19 = vector.load %arg7[%c0_10, %c0_11] : memref<4x1xf32, #tpu.memory_space<vmem>>, vector<4x1xf32>
      %20 = tpu.iota {dimensions = array<i32: 1>} : vector<4x128xi32>
      %c0_i32_12 = arith.constant 0 : i32
      %21 = vector.broadcast %c0_i32_12 : i32 to vector<4x128xi32>
      %22 = arith.cmpi eq, %20, %21 : vector<4x128xi32>
      %cst_13 = arith.constant 0.000000e+00 : f32
      %23 = vector.shape_cast %18 : vector<4x1xf32> to vector<4x1xf32>
      %24 = vector.broadcast %23 : vector<4x1xf32> to vector<4x128xf32>
      %25 = vector.broadcast %cst_13 : f32 to vector<4x128xf32>
      %26 = arith.select %22, %24, %25 : vector<4x128xi1>, vector<4x128xf32>
      %c1_i32_14 = arith.constant 1 : i32
      %27 = vector.broadcast %c1_i32_14 : i32 to vector<4x128xi32>
      %28 = arith.cmpi eq, %20, %27 : vector<4x128xi32>
      %cst_15 = arith.constant 0.000000e+00 : f32
      %29 = vector.shape_cast %19 : vector<4x1xf32> to vector<4x1xf32>
      %30 = vector.broadcast %29 : vector<4x1xf32> to vector<4x128xf32>
      %31 = vector.broadcast %cst_15 : f32 to vector<4x128xf32>
      %32 = arith.select %28, %30, %31 : vector<4x128xi1>, vector<4x128xf32>
      %33 = arith.addf %26, %32 : vector<4x128xf32>
      %c0_16 = arith.constant 0 : index
      %c0_17 = arith.constant 0 : index
      %34 = vector.load %arg3[%c0_16, %c0_17] : memref<128x4xf32, #tpu.memory_space<vmem>>, vector<128x4xf32>
      %cst_18 = arith.constant dense<0.000000e+00> : vector<128x128xf32>
      %35 = tpu.matmul %34, %33, %cst_18 {dimension_numbers = #tpu.dot_dimension_numbers<[1], [0], [0], [1], [0, 0, 1, 1], [], []>} : vector<128x4xf32>, vector<4x128xf32>, vector<128x128xf32> -> vector<128x128xf32>
      %cst_19 = arith.constant 0.000000e+00 : f32
      %36 = vector.broadcast %cst_19 : f32 to vector<128x128xf32>
      %37 = arith.maximumf %35, %36 : vector<128x128xf32>
      %c0_20 = arith.constant 0 : index
      %c0_21 = arith.constant 0 : index
      %38 = vector.load %arg4[%c0_20, %c0_21] : memref<4x128xf32, #tpu.memory_space<vmem>>, vector<4x128xf32>
      %cst_22 = arith.constant dense<0.000000e+00> : vector<4x128xf32>
      %39 = tpu.matmul %38, %37, %cst_22 {dimension_numbers = #tpu.dot_dimension_numbers<[1], [0], [0], [1], [0, 0, 1, 1], [], []>} : vector<4x128xf32>, vector<128x128xf32>, vector<4x128xf32> -> vector<4x128xf32>
      %40 = vector.extract_strided_slice %39 {offsets = [0, 0], sizes = [4, 1], strides = [1, 1]} : vector<4x128xf32> to vector<4x1xf32>
      %41 = vector.extract_strided_slice %39 {offsets = [0, 1], sizes = [4, 1], strides = [1, 1]} : vector<4x128xf32> to vector<4x1xf32>
      %42 = arith.addf %40, %41 : vector<4x1xf32>
      %43 = arith.negf %42 : vector<4x1xf32>
      %44 = math.exp %43 : vector<4x1xf32>
      %cst_23 = arith.constant 1.000000e+00 : f32
      %45 = vector.broadcast %cst_23 : f32 to vector<4x1xf32>
      %46 = arith.addf %45, %44 : vector<4x1xf32>
      %47 = arith.divf %45, %46 : vector<4x1xf32>
      %c0_24 = arith.constant 0 : index
      %c0_25 = arith.constant 0 : index
      %c0_26 = arith.constant 0 : index
      %48 = vector.load %arg5[%c0_24, %c0_25, %c0_26] : memref<1x4x1xf32, #tpu.memory_space<vmem>>, vector<1x4x1xf32>
      %49 = vector.shape_cast %48 : vector<1x4x1xf32> to vector<4x1xf32>
      %50 = vector.shape_cast %47 : vector<4x1xf32> to vector<1x4x1xf32>
      tpu.vector_store %arg5[%c0_24, %c0_25, %c0_26], %50 {strides = array<i32>} : memref<1x4x1xf32, #tpu.memory_space<vmem>>, vector<1x4x1xf32>,
    } else {
    }
    return
  }
  func.func @transform_0(%arg0: i32, %arg1: i32) -> (i32, i32, i32) {
    %c0_i32 = arith.constant 0 : i32
    %c0_i32_0 = arith.constant 0 : i32
    return %arg0, %c0_i32, %arg1 : i32, i32, i32
  }
  func.func @transform_1(%arg0: i32, %arg1: i32) -> (i32, i32) {
    %c0_i32 = arith.constant 0 : i32
    %c0_i32_0 = arith.constant 0 : i32
    %c0_i32_1 = arith.constant 0 : i32
    return %c0_i32, %c0_i32_0 : i32, i32
  }
  func.func @transform_2(%arg0: i32, %arg1: i32) -> (i32, i32) {
    %c0_i32 = arith.constant 0 : i32
    %c0_i32_0 = arith.constant 0 : i32
    %c0_i32_1 = arith.constant 0 : i32
    return %c0_i32, %c0_i32_0 : i32, i32
  }
  func.func @transform_3(%arg0: i32, %arg1: i32) -> (i32, i32, i32) {
    %c0_i32 = arith.constant 0 : i32
    %c0_i32_0 = arith.constant 0 : i32
    %c0_i32_1 = arith.constant 0 : i32
    return %arg0, %c0_i32, %c0_i32_0 : i32, i32, i32
  }
}

</mosaic_0001>

<bundles_post_ra>
// kernel: tpu_custom_call.1
= control target key start
LH: loop header
LB: loop body
LE: loop exit
PB: predicated region body
PF: predicated region fallthrough
CT: control target
= control target key end

     0   :  { %s891_s12 = smov 0   ;;  %s893_s13 = smov 0   ;;  %s1023_s0 = inlined_call_operand.vmem [shape: bf16[2,4,256], index: 0, kind: input, shape index: {}]   ;;  %s1024_s1 = inlined_call_operand.vmem [shape: f32[128,4], index: 1, kind: input, shape index: {}]   ;;  %s1025_s2 = inlined_call_operand.vmem [shape: f32[4,128], index: 2, kind: input, shape index: {}]   ;;  %s1026_s3 = inlined_call_operand.vmem [shape: f32[2,4,1], index: 3, kind: output, shape index: {}]  }
   0x1   :  { %s895_s14 = smov 0   ;;  %s897_s15 = smov 0  }
   0x2   :  { %s899_s16 = smov 0  }
   0x3 LB: > { %s22_s17 = sadd.s32 1, %s856_s14  ;;  %s25_s18 = sadd.s32 1, %s860_s15  ;;  %s864_s16 = sphi %s899_s16, %s13_s16   ;;  %s860_s15 = sphi %s897_s15, %s1030_s15   ;;  %s856_s14 = sphi %s895_s14, %s1029_s14   ;;  %s852_s13 = sphi %s893_s13, %s1028_s13   ;;  %s848_s12 = sphi %s891_s12, %s1027_s12  }
   0x4   : > { %p23_p0 = scmp.ge.s32.totalorder %s22_s17, 2  ;;  %p630_p1 = scmp.ge.s32.totalorder %s864_s16, 1 }
   0x5   : > { %p154_p2 = scmp.lt.s32.totalorder %s864_s16, 5 }
   0x6   : > { %s1032_s17 = smov (%p23_p0, %s22_s17), 0  ;;  %s1034_s18 = smov (!%p23_p0, %s25_s18), %s860_s15 }
   0x7   : > { %p155_p3 = pnand %p630_p1, %p154_p2  ;;  %p27_p4 = scmp.ge.s32.totalorder %s1034_s18, 2 }
   0x8   : > { %p180_p5 = scmp.lt.s32.totalorder (!%p155_p3), %s852_s13, 1  ;;  %p182_p6 = scmp.lt.s32.totalorder (!%p155_p3), %s848_s12, 1  ;;  %vm194_vm0 = vcmask (!%p155_p3), 1043456  }
   0x9   : > { %s1036_s18 = smov (%p27_p4, %s1034_s18), 0  ;;  %158 = sbr.rel (%p155_p3) target bundleno = 931 (0x3a3), region = 32 }
   0xa   : > { %p634_p7 = scmp.ne.s32.totalorder (!%p155_p3), %s848_s12, 0 }
  0x10   : > { %s1038_s13 = smov (!%p180_p5, %s852_s13), 1  ;;  %vm205_vm1 = vcmask (!%p634_p7), 3072  }
  0x11   : > { %s183_s19 = scalar_select %p182_p6, %s848_s12, 1 }
  0x12   : > { %s631_s20 = sshll.u32 %s1038_s13, 1  ;;  %s633_s21 = sshll.u32 %s1038_s13, 2 }
  0x13   : > { %s185_s22 = sadd.s32 %s631_s20, %s183_s19  ;;  %s928_s25 = scalar_lea.vmem %s1026_s3, %s633_s21 }
  0x14   : > { %s632_s26 = sshll.u32 %s185_s22, 1 }
  0x15   : > { %s187_s29 = scalar_lea.vmem %s1023_s0, %s632_s26 }
  0x16   : > { %v192_v0 = vld [vmem:[%s187_s29] sm:$0x3] }
  0x17   : > { %v193_v1 = vunpack.c.l.bf16 %v192_v0 }
  0x19   : > { %v195_v2 = vsel %vm194_vm0, %v193_v1, 0.0  ;;  %v198_v3 = vsel %vm194_vm0, %v193_v1, -inf }
  0x1a   : > { %196 = vadd.xlane.f32.xlu0 %v195_v2 }
  0x1e   : > { %199 = vmax.xlane.f32.xlu0 %v198_v3 }
  0xa5   : > { %204 = sbr.rel (%p634_p7) target bundleno = 173 (0xad), region = 36 }
  0xa7   : > { %v197_v4 = vpop.xlane.xlu0 %196 }
  0xa8   : > { %206 = vst.msk [vmem:[#allocation2] sm:$0xf] (!%p634_p7), %vm205_vm1, %v197_v4 }
  0xab   : > { %v200_v5 = vpop.xlane.xlu0 %199 }
  0xac   : > { %207 = vst.msk [vmem:[#allocation3] sm:$0xf] %vm205_vm1, %v200_v5 }
  0xad PF: > { %p635_p8 = scmp.le.s32.totalorder %s848_s12, 0 }
  0xae   : > { %vm214_vm2 = vcmask (!%p635_p8), 3072  }
  0xaf   : > { %211 = sbr.rel (%p635_p8) target bundleno = 183 (0xb7), region = 40 }
  0xb0   : > { %v212_v6 = vld [vmem:[#allocation2] sm:$0xf] (!%p635_p8) }
  0xb1   : > { %v213_v8 = vadd.f32 (!%p635_p8), %v212_v6, %v197_v4 }
  0xb3   : > { %v216_v7 = vld [vmem:[#allocation3] sm:$0xf] (!%p635_p8)  ;;  %215 = vst.msk [vmem:[#allocation2] sm:$0xf] (!%p635_p8), %vm214_vm2, %v213_v8 }
  0xb4   : > { %v217_v9 = vmax.f32 (!%p635_p8), %v216_v7, %v200_v5 }
  0xb6   : > { %218 = vst.msk [vmem:[#allocation3] sm:$0xf] %vm214_vm2, %v217_v9 }
  0xb7 PF: > { %p636_p9 = scmp.ne.s32.totalorder %s848_s12, 1 }
  0xb8   : > { %v866_v11 = vmov (!%p636_p9), 0   ;;  %v243_v14 = vld [vmem:[%s1024_s1] sm:$0xff] (!%p636_p9)  ;;  %vm259_vm3 = vcmask (!%p636_p9), 31744   ;;  %v226_v15 = vlaneseq (!%p636_p9)  ;;  %v244_v22 = vld [vmem:[%s1024_s1 + $0x8] sm:$0xff] (!%p636_p9)  ;;  %v245_v23 = vld [vmem:[%s1024_s1 + $0x10] sm:$0xff] (!%p636_p9)  ;;  %v867_v37 = vmov (!%p636_p9), 0.0|0.0  }
  0xb9   : > { %222 = sbr.rel (%p636_p9) target bundleno = 931 (0x3a3), region = 44  ;;  %821 = vset.pattern.permute.xlu0 (!%p636_p9), %v866_v11  ;;  %693 = vmatprep.mubr.msk.f32.mxu0 (!%p636_p9), %vm259_vm3, %v243_v14  ;;  %v246_v24 = vld [vmem:[%s1024_s1 + $0x18] sm:$0xff] (!%p636_p9)  ;;  %v247_v25 = vld [vmem:[%s1024_s1 + $0x20] sm:$0xff] (!%p636_p9)  ;;  %v248_v26 = vld [vmem:[%s1024_s1 + $0x28] sm:$0xff] (!%p636_p9)  ;;  %vm868_vm6 = vmmov (!%p636_p9), 0   ;;  %v869_v38 = vmov (!%p636_p9), 0.0  }
  0xba   : > { %v227_v16 = vand.u32 (!%p636_p9), 127, %v226_v15  ;;  %v249_v27 = vld [vmem:[%s1024_s1 + $0x30] sm:$0xff] (!%p636_p9)  ;;  %v250_v28 = vld [vmem:[%s1024_s1 + $0x38] sm:$0xff] (!%p636_p9)  ;;  %v251_v29 = vld [vmem:[%s1024_s1 + $0x40] sm:$0xff] (!%p636_p9)  ;;  %752 = vmatprep.subr.bf16.mxu1 (!%p636_p9), %v867_v37  ;;  %749 = vmatprep.mubr.msk.f32.mxu1 (!%p636_p9), %vm868_vm6, %v869_v38  ;;  %s870_s21 = smov (!%p636_p9), 127   ;;  %vm554_vm7 = vcmask (!%p636_p9), 3072  }
  0xbb   : > { %v223_v10 = vld [vmem:[#allocation2] sm:$0xf] (!%p636_p9)  ;;  %v252_v30 = vld [vmem:[%s1024_s1 + $0x48] sm:$0xff] (!%p636_p9)  ;;  %v253_v31 = vld [vmem:[%s1024_s1 + $0x50] sm:$0xff] (!%p636_p9) }
  0xbc   : > { %v224_v12 = vmul.f32 (!%p636_p9), 0.00390625, %v223_v10  ;;  %vm228_vm4 = vcmp.eq.s32.totalorder (!%p636_p9), %v227_v16, 0  ;;  %vm235_vm5 = vcmp.eq.s32.totalorder (!%p636_p9), %v227_v16, 1  ;;  %v254_v32 = vld [vmem:[%s1024_s1 + $0x58] sm:$0xff] (!%p636_p9)  ;;  %v255_v33 = vld [vmem:[%s1024_s1 + $0x60] sm:$0xff] (!%p636_p9)  ;;  %v256_v34 = vld [vmem:[%s1024_s1 + $0x68] sm:$0xff] (!%p636_p9) }
  0xbd   : > { %v225_v13 = vld [vmem:[#allocation3] sm:$0xf] (!%p636_p9)  ;;  %v257_v35 = vld [vmem:[%s1024_s1 + $0x70] sm:$0xff] (!%p636_p9)  ;;  %v258_v36 = vld [vmem:[%s1024_s1 + $0x78] sm:$0xff] (!%p636_p9) }
  0xbe   : > { %231 = vperm.xlu0 (!%p636_p9), %821, %v224_v12   ;;  %v472_v15 = vld [vmem:[%s1025_s2] sm:$0xf] (!%p636_p9) }
  0xc2   : > { %238 = vperm.xlu0 %821, %v225_v13  }
 0x13d   : > { %v232_v17 = vpop.permute.xlu0 %231 }
 0x13e   : > { %v234_v19 = vsel %vm228_vm4, %v232_v17, 0.0 }
 0x141   : > { %v239_v18 = vpop.permute.xlu0 %238 }
 0x142   : > { %v241_v20 = vsel %vm235_vm5, %v239_v18, 0.0 }
 0x143   : > { %v242_v21 = vadd.f32 %v241_v20, %v234_v19 }
 0x145   : > { %691 = vmatprep.subr.msk.mxu0 %vm194_vm0, %v242_v21 }
 0x146   : > { %692 = vmatpush3.msk.msra.mxu0 %vm194_vm0, %v242_v21 }
 0x147   : > { %694 = vmatmul.mubr.msk.f32.vlgmr.msra.gmra.mrb[0].mxu0 %vm259_vm3, %v244_v22 }
 0x148   : > { %696 = vmatprep.mubr.msk.f32.mxu0 %vm259_vm3, %v245_v23 }
 0x14b   : > { %697 = vmatmul.mubr.msk.f32.gmra.mrb[2].mxu0 %vm259_vm3, %v246_v24 }
 0x14c   : > { %699 = vmatprep.mubr.msk.f32.mxu0 %vm259_vm3, %v247_v25 }
 0x14f   : > { %700 = vmatmul.mubr.msk.f32.gmra.mrb[4].mxu0 %vm259_vm3, %v248_v26 }
 0x150   : > { %702 = vmatprep.mubr.msk.f32.mxu0 %vm259_vm3, %v249_v27 }
 0x153   : > { %703 = vmatmul.mubr.msk.f32.gmra.mrb[6].mxu0 %vm259_vm3, %v250_v28 }
 0x154   : > { %705 = vmatprep.mubr.msk.f32.mxu0 %vm259_vm3, %v251_v29 }
 0x157   : > { %706 = vmatmul.mubr.msk.f32.gmra.mrb[8].mxu0 %vm259_vm3, %v252_v30 }
 0x158   : > { %708 = vmatprep.mubr.msk.f32.mxu0 %vm259_vm3, %v253_v31 }
 0x15b   : > { %709 = vmatmul.mubr.msk.f32.gmra.mrb[10].mxu0 %vm259_vm3, %v254_v32 }
 0x15c   : > { %711 = vmatprep.mubr.msk.f32.mxu0 %vm259_vm3, %v255_v33 }
 0x15f   : > { %712 = vmatmul.mubr.msk.f32.gmra.mrb[12].mxu0 %vm259_vm3, %v256_v34 }
 0x160   : > { %714 = vmatprep.mubr.msk.f32.mxu0 %vm259_vm3, %v257_v35 }
 0x163   : > { %715 = vmatmul.mubr.msk.f32.gmra.mrb[14].mxu0 %vm259_vm3, %v258_v36 }
 0x21a   : > { %v695_v39 = vpop.f32.mrb[0].mxu0 }
 0x21b   : > { %v457_v40 = vmax.f32 %v695_v39, 0.0  ;;  %v377_v41 = vpop.f32.mrb[1].mxu0 }
 0x21c   : > { %v456_v42 = vmax.f32 %v377_v41, 0.0 }
 0x21e   : > { %v698_v43 = vpop.f32.mrb[2].mxu0  ;;  %v753_v44 = vpack.c.bf16 %v457_v40, %v456_v42 }
 0x21f   : > { %v459_v45 = vmax.f32 %v698_v43, 0.0  ;;  %v387_v46 = vpop.f32.mrb[3].mxu0 }
 0x220   : > { %v458_v47 = vmax.f32 %v387_v46, 0.0  ;;  %754 = vmatpush3.bf16.msra.mxu1 %v753_v44 }
 0x221   : > { %755 = vmatprep.subr.bf16.mxu1 %v867_v37 }
 0x222   : > { %v756_v48 = vpack.c.bf16 %v459_v45, %v458_v47  ;;  %v701_v49 = vpop.f32.mrb[4].mxu0 }
 0x223   : > { %v461_v50 = vmax.f32 %v701_v49, 0.0  ;;  %v397_v51 = vpop.f32.mrb[5].mxu0 }
 0x224   : > { %v460_v52 = vmax.f32 %v397_v51, 0.0  ;;  %757 = vmatpush3.bf16.msra.mxu1 %v756_v48 }
 0x225   : > { %758 = vmatprep.subr.bf16.mxu1 %v867_v37 }
 0x226   : > { %v759_v53 = vpack.c.bf16 %v461_v50, %v460_v52  ;;  %v704_v54 = vpop.f32.mrb[6].mxu0 }
 0x227   : > { %v463_v55 = vmax.f32 %v704_v54, 0.0  ;;  %v407_v56 = vpop.f32.mrb[7].mxu0 }
 0x228   : > { %v462_v57 = vmax.f32 %v407_v56, 0.0  ;;  %760 = vmatpush3.bf16.msra.mxu1 %v759_v53 }
 0x229   : > { %761 = vmatprep.subr.bf16.mxu1 %v867_v37 }
 0x22a   : > { %v762_v58 = vpack.c.bf16 %v463_v55, %v462_v57  ;;  %v707_v59 = vpop.f32.mrb[8].mxu0 }
 0x22b   : > { %v465_v60 = vmax.f32 %v707_v59, 0.0  ;;  %v417_v61 = vpop.f32.mrb[9].mxu0 }
 0x22c   : > { %v464_v62 = vmax.f32 %v417_v61, 0.0  ;;  %763 = vmatpush3.bf16.msra.mxu1 %v762_v58 }
 0x22d   : > { %764 = vmatprep.subr.bf16.mxu1 %v867_v37 }
 0x22e   : > { %v765_v63 = vpack.c.bf16 %v465_v60, %v464_v62  ;;  %v710_v0 = vpop.f32.mrb[10].mxu0 }
 0x22f   : > { %v467_v1 = vmax.f32 %v710_v0, 0.0  ;;  %v427_v2 = vpop.f32.mrb[11].mxu0 }
 0x230   : > { %v466_v3 = vmax.f32 %v427_v2, 0.0  ;;  %766 = vmatpush3.bf16.msra.mxu1 %v765_v63 }
 0x231   : > { %767 = vmatprep.subr.bf16.mxu1 %v867_v37 }
 0x232   : > { %v768_v4 = vpack.c.bf16 %v467_v1, %v466_v3  ;;  %v713_v5 = vpop.f32.mrb[12].mxu0 }
 0x233   : > { %v469_v6 = vmax.f32 %v713_v5, 0.0  ;;  %v437_v7 = vpop.f32.mrb[13].mxu0 }
 0x234   : > { %v468_v8 = vmax.f32 %v437_v7, 0.0  ;;  %769 = vmatpush3.bf16.msra.mxu1 %v768_v4 }
 0x235   : > { %770 = vmatprep.subr.bf16.mxu1 %v867_v37 }
 0x236   : > { %v771_v9 = vpack.c.bf16 %v469_v6, %v468_v8  ;;  %v716_v10 = vpop.f32.mrb[14].mxu0 }
 0x237   : > { %v471_v11 = vmax.f32 %v716_v10, 0.0  ;;  %v447_v12 = vpop.f32.mrb[15].mxu0 }
 0x238   : > { %v470_v13 = vmax.f32 %v447_v12, 0.0  ;;  %772 = vmatpush3.bf16.msra.mxu1 %v771_v9 }
 0x239   : > { %773 = vmatprep.subr.bf16.mxu1 %v867_v37 }
 0x23a   : > { %v774_v14 = vpack.c.bf16 %v471_v11, %v470_v13 }
 0x23c   : > { %775 = vmatpush3.bf16.msra.mxu1 %v774_v14 }
 0x23f   : > { %750 = vmatmul.mubr.f32.vlgmr.msra.gmra.mrb[0].mxu1 %v472_v15 }
 0x312   : > { %v539_v16 = vpop.f32.mrb[0].mxu1 }
 0x313   : > { %544 = vrot.lane.b32.xlu1 %v539_v16, %s870_s21  ;;  %v751_v17 = vpop.f32.mrb[1].mxu1 }
 0x385   : > { %v545_v18 = vpop.permute.xlu1 %544 }
 0x386   : > { %v547_v19 = vadd.f32 %v545_v18, %v539_v16 }
 0x388   : > { %v654_v20 = vmul.f32 -1.442695, %v547_v19 }
 0x38a   : > { %822 = vpow2.f32 %v654_v20 }
 0x394   : > { %v823_v21 = vpop.eup %822 }
 0x395   : > { %v551_v22 = vadd.f32 1.0, %v823_v21 }
 0x397   : > { %824 = vrcp.f32 %v551_v22 }
 0x3a1   : > { %v825_v23 = vpop.eup %824 }
 0x3a2   : > { %555 = vst.msk [vmem:[%s928_s25] sm:$0xf] %vm554_vm7, %v825_v23 }
 0x3a3 PF: > { %s13_s16 = sadd.s32 1, %s864_s16   ;;  %s1027_s12 = smov %s856_s14 }
 0x3a4   : > { %p10_p10 = scmp.ge.s32.totalorder %s13_s16, 6   ;;  %s1028_s13 = smov %s860_s15 }
 0x3a5   : > { %s1029_s14 = smov %s1032_s17  ;;  %s1030_s15 = smov %s1036_s18 }
 0x3a6   :  { %12 = sbr.rel (!%p10_p10) target bundleno = 3 (0x3), region = 74 }

</bundles_post_ra>
